<compile_context>
chip_gen: v6e
topology: v6e:2x2x1
jax: 0.10.0
libtpu: 0.0.40
codegen_flags: <defaults>
</compile_context>

<pallas_src>
import functools

import jax
import jax.numpy as jnp
from jax import lax
from jax.experimental import pallas as pl
from jax.experimental.pallas import tpu as pltpu


def _abduction_kernel(x_ref, w1_ref, b1_ref, w2_ref, b2_ref,
                      wh_ref, bh_ref, out_ref, *, latent_dim):
    x = x_ref[...]

    # Hoisted single reads of the (VMEM-resident) weights / biases.
    w1 = w1_ref[...]
    b1 = b1_ref[...]
    w2 = w2_ref[...]
    b2 = b2_ref[...]
    wh = wh_ref[...]
    bh = bh_ref[...]

    # Shared MLP: Linear -> ReLU -> Linear -> ReLU (f32 accumulation on MXU).
    h1 = jnp.dot(x, w1, preferred_element_type=jnp.float32) + b1
    h1 = jnp.maximum(h1, 0.0)
    h2 = jnp.dot(h1, w2, preferred_element_type=jnp.float32) + b2
    h2 = jnp.maximum(h2, 0.0)

    # Fused heads: one matmul producing [TB, 2L] = [loc | pre-softplus scale].
    y = jnp.dot(h2, wh, preferred_element_type=jnp.float32) + bh

    # Stable, cheap softplus: max(y, 0) + log1p(exp(-|y|)).
    sp = jnp.maximum(y, 0.0) + jnp.log1p(jnp.exp(-jnp.abs(y)))

    # Lane-select: first L lanes = identity (location), last L = softplus (scale).
    lane = lax.broadcasted_iota(jnp.int32, y.shape, 1)
    out_ref[...] = jnp.where(lane < latent_dim, y, sp).astype(out_ref.dtype)


def abduction_network_forward(x, params, *, batch_tile=1024):
    """x: [B, representation_dim] -> (location [B, L], scale [B, L])."""
    (w1, b1, w2, b2, wl, bl, ws, bs) = params
    B, R = x.shape
    H1 = w1.shape[1]
    H2 = w2.shape[1]
    L = wl.shape[1]

    # Fuse the two heads: [H2, 2L] weight, [1, 2L] bias.
    w_head = jnp.concatenate([wl, ws], axis=1)
    b_head = jnp.concatenate([bl, bs], axis=1)

    # Batch tiling: one full block if small, else TB-row tiles (TB % 8 == 0).
    if B <= batch_tile:
        tb = B
    else:
        tb = batch_tile
    grid = (pl.cdiv(B, tb),)

    def batch_map(i):
        return (i, 0)

    def const_map(i):
        return (0, 0)

    in_specs = [
        pl.BlockSpec((tb, R), batch_map),            # x: tiled over batch
        pl.BlockSpec(w1.shape, const_map),           # weights/biases: resident
        pl.BlockSpec(b1.shape, const_map),
        pl.BlockSpec(w2.shape, const_map),
        pl.BlockSpec(b2.shape, const_map),
        pl.BlockSpec(w_head.shape, const_map),
        pl.BlockSpec(b_head.shape, const_map),
    ]
    out_spec = pl.BlockSpec((tb, 2 * L), batch_map)
    out_shape = jax.ShapeDtypeStruct((B, 2 * L), jnp.float32)

    itemsize = jnp.dtype(x.dtype).itemsize
    param_bytes = sum(int(p.size) * jnp.dtype(p.dtype).itemsize
                      for p in (w1, b1, w2, b2, w_head, b_head))
    cost = pl.CostEstimate(
        flops=2 * B * (R * H1 + H1 * H2 + H2 * 2 * L),
        transcendentals=2 * B * 2 * L,                       # exp + log1p
        bytes_accessed=B * R * itemsize + B * 2 * L * 4 + param_bytes,
    )

    kernel = functools.partial(_abduction_kernel, latent_dim=L)
    fused = pl.pallas_call(
        kernel,
        out_shape=out_shape,
        grid=grid,
        in_specs=in_specs,
        out_specs=out_spec,
        compiler_params=pltpu.CompilerParams(
            dimension_semantics=("parallel",)),
        cost_estimate=cost,
    )(x, w1, b1, w2, b2, w_head, b_head)

    location = fused[:, :L]
    scale = fused[:, L:]
    return location, scale


def init_params(key, representation_dim, latent_dim, hidden_dims=(64, 32)):
    """PyTorch-Linear-style init: U(-1/sqrt(fan_in), 1/sqrt(fan_in))."""
    dims = [representation_dim, *hidden_dims]
    params = []
    keys = jax.random.split(key, 2 * (len(hidden_dims) + 2))
    ki = 0

    def linear(in_d, out_d):
        nonlocal ki
        bound = 1.0 / jnp.sqrt(jnp.float32(in_d))
        w = jax.random.uniform(keys[ki], (in_d, out_d), jnp.float32, -bound, bound)
        b = jax.random.uniform(keys[ki + 1], (1, out_d), jnp.float32, -bound, bound)
        ki += 2
        return w, b

    for i in range(len(hidden_dims)):
        w, b = linear(dims[i], dims[i + 1])
        params += [w, b]
    wl, bl = linear(dims[-1], latent_dim)
    ws, bs = linear(dims[-1], latent_dim)
    params += [wl, bl, ws, bs]
    return tuple(params)


def _reference_forward(x, params):
    """Pure-JAX reference for verification."""
    (w1, b1, w2, b2, wl, bl, ws, bs) = params
    h = jnp.maximum(x @ w1 + b1, 0.0)
    h = jnp.maximum(h @ w2 + b2, 0.0)
    loc = h @ wl + bl
    scale = jax.nn.softplus(h @ ws + bs)
    return loc, scale


if __name__ == "__main__":
    representation_dim = 32
    latent_dim = 16
    hidden_dims = (64, 32)

    key = jax.random.PRNGKey(0)
    k_x, k_p, k_x2 = jax.random.split(key, 3)
    params = init_params(k_p, representation_dim, latent_dim, hidden_dims)

    # Small case: single block (B <= batch_tile).
    batch = 8
    x = jax.random.normal(k_x, (batch, representation_dim), jnp.float32)
    loc, scale = abduction_network_forward(x, params)
    loc = jax.block_until_ready(loc)
    scale = jax.block_until_ready(scale)
    loc_ref, scale_ref = _reference_forward(x, params)
    assert jnp.allclose(loc, loc_ref, atol=1e-5, rtol=1e-5)
    assert jnp.allclose(scale, scale_ref, atol=1e-5, rtol=1e-5)
    assert bool(jnp.all(scale > 0.0))

    # Multi-step grid case (exercises batch tiling + partial last block).
    batch2 = 272
    x2 = jax.random.normal(k_x2, (batch2, representation_dim), jnp.float32)
    loc2, scale2 = abduction_network_forward(x2, params, batch_tile=128)
    loc2 = jax.block_until_ready(loc2)
    scale2 = jax.block_until_ready(scale2)
    loc2_ref, scale2_ref = _reference_forward(x2, params)
    assert jnp.allclose(loc2, loc2_ref, atol=1e-5, rtol=1e-5)
    assert jnp.allclose(scale2, scale2_ref, atol=1e-5, rtol=1e-5)
    assert bool(jnp.all(scale2 > 0.0))

    print("KERNEL_OK")
</pallas_src>

<mosaic_0001>
module attributes {stable_mosaic.version = 11 : i64} {
  func.func @_abduction_kernel(%arg0: i32, %arg1: memref<8x32xf32, #tpu.memory_space<vmem>>, %arg2: memref<32x64xf32, #tpu.memory_space<vmem>>, %arg3: memref<1x64xf32, #tpu.memory_space<vmem>>, %arg4: memref<64x32xf32, #tpu.memory_space<vmem>>, %arg5: memref<1x32xf32, #tpu.memory_space<vmem>>, %arg6: memref<32x32xf32, #tpu.memory_space<vmem>>, %arg7: memref<1x32xf32, #tpu.memory_space<vmem>>, %arg8: memref<8x32xf32, #tpu.memory_space<vmem>>) attributes {dimension_semantics = [#tpu.dimension_semantics<parallel>], iteration_bounds = array<i64: 1>, scalar_prefetch = 0 : i64, scratch_operands = 0 : i64, tpu.core_type = #tpu.core_type<tc>, window_params = [{transform_indices = @transform_0, window_bounds = array<i64: 8, 32>}, {pipeline_mode = #tpu.pipeline_mode<synchronous>, transform_indices = @transform_1, window_bounds = array<i64: 32, 64>}, {pipeline_mode = #tpu.pipeline_mode<synchronous>, transform_indices = @transform_2, window_bounds = array<i64: 1, 64>}, {pipeline_mode = #tpu.pipeline_mode<synchronous>, transform_indices = @transform_3, window_bounds = array<i64: 64, 32>}, {pipeline_mode = #tpu.pipeline_mode<synchronous>, transform_indices = @transform_4, window_bounds = array<i64: 1, 32>}, {pipeline_mode = #tpu.pipeline_mode<synchronous>, transform_indices = @transform_5, window_bounds = array<i64: 32, 32>}, {pipeline_mode = #tpu.pipeline_mode<synchronous>, transform_indices = @transform_6, window_bounds = array<i64: 1, 32>}, {transform_indices = @transform_7, window_bounds = array<i64: 8, 32>}]} {
    %c0 = arith.constant 0 : index
    %c0_0 = arith.constant 0 : index
    %0 = vector.load %arg1[%c0, %c0_0] : memref<8x32xf32, #tpu.memory_space<vmem>>, vector<8x32xf32>
    %c0_1 = arith.constant 0 : index
    %c0_2 = arith.constant 0 : index
    %1 = vector.load %arg2[%c0_1, %c0_2] : memref<32x64xf32, #tpu.memory_space<vmem>>, vector<32x64xf32>
    %c0_3 = arith.constant 0 : index
    %c0_4 = arith.constant 0 : index
    %2 = vector.load %arg3[%c0_3, %c0_4] : memref<1x64xf32, #tpu.memory_space<vmem>>, vector<1x64xf32>
    %c0_5 = arith.constant 0 : index
    %c0_6 = arith.constant 0 : index
    %3 = vector.load %arg4[%c0_5, %c0_6] : memref<64x32xf32, #tpu.memory_space<vmem>>, vector<64x32xf32>
    %c0_7 = arith.constant 0 : index
    %c0_8 = arith.constant 0 : index
    %4 = vector.load %arg5[%c0_7, %c0_8] : memref<1x32xf32, #tpu.memory_space<vmem>>, vector<1x32xf32>
    %c0_9 = arith.constant 0 : index
    %c0_10 = arith.constant 0 : index
    %5 = vector.load %arg6[%c0_9, %c0_10] : memref<32x32xf32, #tpu.memory_space<vmem>>, vector<32x32xf32>
    %c0_11 = arith.constant 0 : index
    %c0_12 = arith.constant 0 : index
    %6 = vector.load %arg7[%c0_11, %c0_12] : memref<1x32xf32, #tpu.memory_space<vmem>>, vector<1x32xf32>
    %cst = arith.constant dense<0.000000e+00> : vector<8x64xf32>
    %7 = tpu.matmul %0, %1, %cst {dimension_numbers = #tpu.dot_dimension_numbers<[1], [0], [0], [1], [0, 0, 1, 1], [], []>} : vector<8x32xf32>, vector<32x64xf32>, vector<8x64xf32> -> vector<8x64xf32>
    %8 = vector.broadcast %2 : vector<1x64xf32> to vector<8x64xf32>
    %9 = arith.addf %7, %8 : vector<8x64xf32>
    %cst_13 = arith.constant 0.000000e+00 : f32
    %10 = vector.broadcast %cst_13 : f32 to vector<8x64xf32>
    %11 = arith.maximumf %9, %10 : vector<8x64xf32>
    %cst_14 = arith.constant dense<0.000000e+00> : vector<8x32xf32>
    %12 = tpu.matmul %11, %3, %cst_14 {dimension_numbers = #tpu.dot_dimension_numbers<[1], [0], [0], [1], [0, 0, 1, 1], [], []>} : vector<8x64xf32>, vector<64x32xf32>, vector<8x32xf32> -> vector<8x32xf32>
    %13 = vector.broadcast %4 : vector<1x32xf32> to vector<8x32xf32>
    %14 = arith.addf %12, %13 : vector<8x32xf32>
    %cst_15 = arith.constant 0.000000e+00 : f32
    %15 = vector.broadcast %cst_15 : f32 to vector<8x32xf32>
    %16 = arith.maximumf %14, %15 : vector<8x32xf32>
    %cst_16 = arith.constant dense<0.000000e+00> : vector<8x32xf32>
    %17 = tpu.matmul %16, %5, %cst_16 {dimension_numbers = #tpu.dot_dimension_numbers<[1], [0], [0], [1], [0, 0, 1, 1], [], []>} : vector<8x32xf32>, vector<32x32xf32>, vector<8x32xf32> -> vector<8x32xf32>
    %18 = vector.broadcast %6 : vector<1x32xf32> to vector<8x32xf32>
    %19 = arith.addf %17, %18 : vector<8x32xf32>
    %cst_17 = arith.constant 0.000000e+00 : f32
    %20 = vector.broadcast %cst_17 : f32 to vector<8x32xf32>
    %21 = arith.maximumf %19, %20 : vector<8x32xf32>
    %22 = math.absf %19 : vector<8x32xf32>
    %cst_18 = arith.constant 0.000000e+00 : f32
    %23 = vector.broadcast %cst_18 : f32 to vector<8x32xf32>
    %24 = arith.subf %23, %22 : vector<8x32xf32>
    %25 = math.exp %24 : vector<8x32xf32>
    %26 = math.log1p %25 : vector<8x32xf32>
    %27 = arith.addf %21, %26 : vector<8x32xf32>
    %28 = tpu.iota {dimensions = array<i32: 1>} : vector<8x32xi32>
    %c16_i32 = arith.constant 16 : i32
    %29 = vector.broadcast %c16_i32 : i32 to vector<8x32xi32>
    %30 = arith.cmpi slt, %28, %29 : vector<8x32xi32>
    %31 = arith.select %30, %19, %27 : vector<8x32xi1>, vector<8x32xf32>
    %c0_19 = arith.constant 0 : index
    %c0_20 = arith.constant 0 : index
    %32 = vector.load %arg8[%c0_19, %c0_20] : memref<8x32xf32, #tpu.memory_space<vmem>>, vector<8x32xf32>
    tpu.vector_store %arg8[%c0_19, %c0_20], %31 {strides = array<i32>} : memref<8x32xf32, #tpu.memory_space<vmem>>, vector<8x32xf32>,
    return
  }
  func.func @transform_0(%arg0: i32) -> (i32, i32) {
    %c0_i32 = arith.constant 0 : i32
    %c0_i32_0 = arith.constant 0 : i32
    return %arg0, %c0_i32 : i32, i32
  }
  func.func @transform_1(%arg0: i32) -> (i32, i32) {
    %c0_i32 = arith.constant 0 : i32
    %c0_i32_0 = arith.constant 0 : i32
    %c0_i32_1 = arith.constant 0 : i32
    return %c0_i32, %c0_i32_0 : i32, i32
  }
  func.func @transform_2(%arg0: i32) -> (i32, i32) {
    %c0_i32 = arith.constant 0 : i32
    %c0_i32_0 = arith.constant 0 : i32
    %c0_i32_1 = arith.constant 0 : i32
    return %c0_i32, %c0_i32_0 : i32, i32
  }
  func.func @transform_3(%arg0: i32) -> (i32, i32) {
    %c0_i32 = arith.constant 0 : i32
    %c0_i32_0 = arith.constant 0 : i32
    %c0_i32_1 = arith.constant 0 : i32
    return %c0_i32, %c0_i32_0 : i32, i32
  }
  func.func @transform_4(%arg0: i32) -> (i32, i32) {
    %c0_i32 = arith.constant 0 : i32
    %c0_i32_0 = arith.constant 0 : i32
    %c0_i32_1 = arith.constant 0 : i32
    return %c0_i32, %c0_i32_0 : i32, i32
  }
  func.func @transform_5(%arg0: i32) -> (i32, i32) {
    %c0_i32 = arith.constant 0 : i32
    %c0_i32_0 = arith.constant 0 : i32
    %c0_i32_1 = arith.constant 0 : i32
    return %c0_i32, %c0_i32_0 : i32, i32
  }
  func.func @transform_6(%arg0: i32) -> (i32, i32) {
    %c0_i32 = arith.constant 0 : i32
    %c0_i32_0 = arith.constant 0 : i32
    %c0_i32_1 = arith.constant 0 : i32
    return %c0_i32, %c0_i32_0 : i32, i32
  }
  func.func @transform_7(%arg0: i32) -> (i32, i32) {
    %c0_i32 = arith.constant 0 : i32
    %c0_i32_0 = arith.constant 0 : i32
    return %arg0, %c0_i32 : i32, i32
  }
}

</mosaic_0001>

<bundles_post_ra>
// kernel: tpu_custom_call.1
= control target key start
LH: loop header
LB: loop body
LE: loop exit
PB: predicated region body
PF: predicated region fallthrough
CT: control target
= control target key end

     0   :  { %v417_v1 = vmov 0.0   ;;  %vm418_vm0 = vmmov 0   ;;  %s529_s0 = inlined_call_operand.vmem [shape: f32[8,32], index: 0, kind: input, shape index: {}]   ;;  %s530_s1 = inlined_call_operand.vmem [shape: f32[32,64], index: 1, kind: input, shape index: {}]   ;;  %s531_s2 = inlined_call_operand.vmem [shape: f32[1,64], index: 2, kind: input, shape index: {}]   ;;  %s532_s3 = inlined_call_operand.vmem [shape: f32[64,32], index: 3, kind: input, shape index: {}]   ;;  %s533_s4 = inlined_call_operand.vmem [shape: f32[1,32], index: 4, kind: input, shape index: {}]   ;;  %s534_s5 = inlined_call_operand.vmem [shape: f32[32,32], index: 5, kind: input, shape index: {}]   ;;  %s535_s6 = inlined_call_operand.vmem [shape: f32[1,32], index: 6, kind: input, shape index: {}]   ;;  %s536_s7 = inlined_call_operand.hbm [shape: f32[8,32], index: 7, kind: output, shape index: {}]  }
   0x1   :  { %v31_v0 = vld [vmem:[%s530_s1 + $0x18] sm:$0xff]  ;;  %347 = vmatprep.subr.mxu0 %v417_v1  ;;  %v30_v2 = vld [vmem:[%s530_s1 + $0x10] sm:$0xff]  ;;  %355 = vmatprep.mubr.msk.f32.mxu0 %vm418_vm0, %v417_v1  ;;  %v29_v5 = vld [vmem:[%s530_s1 + $0x8] sm:$0xff] }
   0x2   :  { %v40_v3 = vld [vmem:[%s532_s3 + $0x38] sm:$0xff]  ;;  %348 = vmatpush3.msra.mxu0 %v31_v0  ;;  %358 = vmatprep.subr.mxu1 %v417_v1  ;;  %v39_v4 = vld [vmem:[%s532_s3 + $0x30] sm:$0xff] }
   0x3   :  { %349 = vmatprep.subr.mxu0 %v417_v1  ;;  %359 = vmatpush3.msra.mxu1 %v40_v3 }
   0x4   :  { %12 = vsyncpa [#allocation3], 0  ;;  %350 = vmatpush3.msra.mxu0 %v30_v2  ;;  %360 = vmatprep.subr.mxu1 %v417_v1  ;;  %v38_v6 = vld [vmem:[%s532_s3 + $0x28] sm:$0xff]  ;;  %v28_v7 = vld [vmem:[%s530_s1] sm:$0xff]  ;;  %vm53_vm1 = vcmask 261120   ;;  %vm134_vm2 = vcmask 523264   ;;  %v303_v38 = vlaneseq }
   0x5   :  { %351 = vmatprep.subr.mxu0 %v417_v1  ;;  %361 = vmatpush3.msra.mxu1 %v39_v4  ;;  %v27_v8 = vld [vmem:[%s529_s0] sm:$0xff]  ;;  %v36_v10 = vld [vmem:[%s532_s3 + $0x18] sm:$0xff]  ;;  %v35_v11 = vld [vmem:[%s532_s3 + $0x10] sm:$0xff] }
   0x6   :  { %352 = vmatpush3.msra.mxu0 %v29_v5  ;;  %362 = vmatprep.subr.mxu1 %v417_v1  ;;  %v37_v9 = vld [vmem:[%s532_s3 + $0x20] sm:$0xff]  ;;  %v34_v12 = vld [vmem:[%s532_s3 + $0x8] sm:$0xff]  ;;  %v45_v14 = vld [vmem:[%s534_s5 + $0x18] sm:$0xff]  ;;  %v304_v41 = vand.u32 127, %v303_v38 }
   0x7   :  { %353 = vmatprep.subr.mxu0 %v417_v1  ;;  %363 = vmatpush3.msra.mxu1 %v38_v6  ;;  %v33_v13 = vld [vmem:[%s532_s3] sm:$0xff]  ;;  %v44_v20 = vld [vmem:[%s534_s5 + $0x10] sm:$0xff]  ;;  %v43_v21 = vld [vmem:[%s534_s5 + $0x8] sm:$0xff] }
   0x8   :  { %354 = vmatpush3.msra.mxu0 %v28_v7  ;;  %364 = vmatprep.subr.mxu1 %v417_v1  ;;  %v322_v15 = vld [vmem:[%s531_s2] ss:$0 sm:$0xff]  ;;  %vm305_vm4 = vcmp.lt.s32.totalorder %v304_v41, 16 }
   0x9   :  { %356 = vmatmul.mubr.msk.f32.vlgmr.msra.gmra.mxu0 %vm53_vm1, %v27_v8  ;;  %365 = vmatpush3.msra.mxu1 %v37_v9  ;;  %v42_v22 = vld [vmem:[%s534_s5] sm:$0xff] }
   0xa   :  { %366 = vmatprep.subr.mxu1 %v417_v1  ;;  %374 = vmatprep.mubr.msk.f32.mxu1 %vm418_vm0, %v417_v1  ;;  %v324_v23 = vld [vmem:[%s533_s4] ss:$0 sm:$0xff]  ;;  %s419_s4 = smov [#allocation2]  }
   0xb   :  { %367 = vmatpush3.msra.mxu1 %v36_v10  ;;  %377 = vmatprep.subr.mxu0 %v417_v1  ;;  %v326_v28 = vld [vmem:[%s535_s6] ss:$0 sm:$0xff]  ;;  %s314_s5 = sshll.u32 %s419_s4, 4  ;;  %s315_s5 = int_to_ptr.vmem [resolvable:$true] %s314_s5 }
   0xc   :  { %368 = vmatprep.subr.mxu1 %v417_v1  ;;  %385 = vmatprep.mubr.msk.f32.mxu0 %vm418_vm0, %v417_v1  ;;  %s395_s6 = scalar_lea.vmem %s315_s5, 128  ;;  %p400_p1 = scmp.lt.s32.totalorder %s315_s5, %s315_s5 }
   0xd   :  { %369 = vmatpush3.msra.mxu1 %v35_v11  ;;  %378 = vmatpush3.msra.mxu0 %v45_v14  ;;  %p396_p0 = scmp.ne.s32.totalorder %s315_s5, %s395_s6  ;;  %p401_p2 = scmp.lt.s32.totalorder %s395_s6, %s395_s6 }
   0xe   :  { %370 = vmatprep.subr.mxu1 %v417_v1  ;;  %379 = vmatprep.subr.mxu0 %v417_v1 }
   0xf   :  { %371 = vmatpush3.msra.mxu1 %v34_v12  ;;  %380 = vmatpush3.msra.mxu0 %v44_v20  ;;  %p402_p3 = por %p401_p2, %p400_p1 }
  0x10   :  { %372 = vmatprep.subr.mxu1 %v417_v1  ;;  %381 = vmatprep.subr.mxu0 %v417_v1 }
  0x11   :  { %373 = vmatpush3.msra.mxu1 %v33_v13  ;;  %382 = vmatpush3.msra.mxu0 %v43_v21  ;;  %p403_p4 = pnand %p402_p3, %p396_p0 }
  0x12   :  { %383 = vmatprep.subr.mxu0 %v417_v1 }
  0x13   :  { %384 = vmatpush3.msra.mxu0 %v42_v22 }
  0xc9   :  { %v123_v16 = vpop.f32.mrf.mxu0 }
  0xca   :  { %v124_v17 = vadd.f32 %v322_v15, %v123_v16 }
  0xcb   :  { %v357_v18 = vpop.f32.mrf.mxu0 }
  0xcc   :  { %v127_v19 = vmax.f32 %v124_v17, 0.0 }
  0xce   :  { %375 = vmatmul.mubr.msk.f32.vlgmr.msra.gmra.mxu1 %vm134_vm2, %v127_v19 }
 0x18e   :  { %v204_v24 = vpop.f32.mrf.mxu1 }
 0x18f   :  { %v205_v25 = vadd.f32 %v324_v23, %v204_v24 }
 0x190   :  { %v376_v26 = vpop.f32.mrf.mxu1 }
 0x191   :  { %v208_v27 = vmax.f32 %v205_v25, 0.0 }
 0x193   :  { %386 = vmatmul.mubr.msk.f32.vlgmr.msra.gmra.mxu0 %vm53_vm1, %v208_v27 }
 0x253   :  { %v284_v29 = vpop.f32.mrf.mxu0 }
 0x254   :  { %v285_v30 = vadd.f32 %v326_v28, %v284_v29 }
 0x255   :  { %v387_v31 = vpop.f32.mrf.mxu0 }
 0x256   :  { %v289_v32 = vand.u32 2147483647, %v285_v30  ;;  %v288_v45 = vmax.f32 %v285_v30, 0.0 }
 0x258   :  { %v290_v33 = vsub.f32 0.0, %v289_v32 }
 0x25a   :  { %v291_v34 = vmul.f32 1.442695, %v290_v33 }
 0x25c   :  { %391 = vpow2.f32 %v291_v34 }
 0x269   :  { %v392_v35 = vpop.eup %391 }
 0x26a   :  { %v293_v36 = vadd.f32 1.0, %v392_v35  ;;  %v296_v37 = vmul.f32 -0.5, %v392_v35  ;;  %v299_v40 = vand.u32 2147483647, %v392_v35 }
 0x26c   :  { %393 = vlog2.f32 %v293_v36  ;;  %v297_v39 = vadd.f32 1.0, %v296_v37  ;;  %vm300_vm3 = vcmp.lt.f32.partialorder %v299_v40, 0.0004427343 }
 0x26e   :  { %v298_v44 = vmul.f32 %v392_v35, %v297_v39 }
 0x279   :  { %v394_v42 = vpop.eup %393 }
 0x27a   :  { %v295_v43 = vmul.f32 0.6931472, %v394_v42 }
 0x27c   :  { %v301_v46 = vsel %vm300_vm3, %v298_v44, %v295_v43 }
 0x27d   :  { %v302_v47 = vadd.f32 %v301_v46, %v288_v45 }
 0x27f   :  { %v306_v48 = vsel %vm305_vm4, %v285_v30, %v302_v47 }
 0x280   :  { %307 = vst.msk [vmem:[#allocation2] sm:$0xff] %vm53_vm1, %v306_v48 }
 0x281   :  { %406 = shalt.err (!%p403_p4)
}
 0x282   :  { %317 = dma.vmem_to_hbm [thread:$0]  %s315_s5, 128, %s536_s7, [#allocation3]  }
 0x283   :  { %415 = dma.done.wait [#allocation3], 128  }
 0x284   :  { %416 = vsyncadd [#allocation3], 4294967168 }
 0x285   :  { %321 = vsyncpa [#allocation3], 1 }

</bundles_post_ra>
